<compile_context>
chip_gen: v5e
topology: v5e:2x2
jax: 0.10.0
libtpu: 0.0.40
codegen_flags: <defaults>
</compile_context>

<pallas_src>
import jax
import jax.numpy as jnp
from jax.experimental import pallas as pl
from jax.experimental.pallas import tpu as pltpu


def _copy_kernel(x_ref, o_ref):
    # Straight VMEM tile copy (the "compute" of an identity forward).
    o_ref[...] = x_ref[...]


_TILE_BYTES_CAP = 4 * 1024 * 1024   # per-buffer tile; x4 (in+out, double-buffered) = 16 MiB VMEM
_MAX_LANE = 4096                    # lane-dense last dim (multiple of 128)
_PAD_LANE = 512                     # lane used on the padded (non-128-multiple) path
_VMEM_LIMIT_BYTES = 32 << 20        # explicit scoped-VMEM limit; fits every generation


def _sublane_align(itemsize):
    # Dtype-aware sublane alignment: f32 -> 8, bf16/fp16 -> 16, int8/fp8 -> 32.
    return max(8, 32 // itemsize)


def _pick_row_tile(rows, lane, itemsize):
    align = _sublane_align(itemsize)
    if rows < align:
        return rows  # tiny array: single full-extent block (always a legal block shape)
    cap_rows = max(align, (_TILE_BYTES_CAP // (lane * itemsize)) // align * align)
    # Target >= 2 grid steps so the "parallel" axis can shard across both v7x TCs.
    half_rows = align * pl.cdiv(rows, 2 * align)
    return max(align, min(cap_rows, half_rows))


def _materialized_copy(x):
    """Genuine (non-aliased) identity copy of x via a lane-dense Pallas copy kernel."""
    total = x.size
    itemsize = jnp.dtype(x.dtype).itemsize

    if total % 128 == 0:
        # Keep the data lane-dense without padding: largest 128-multiple divisor <= 4096.
        lane = next(c for c in range(_MAX_LANE, 127, -128) if total % c == 0)
        pad = 0
        flat = x.reshape(total // lane, lane)
    else:
        # Pad the flat array up to a lane multiple; keeps the copy on the
        # wide-store path and eliminates any whole-array-in-VMEM fallback.
        lane = _PAD_LANE
        padded = pl.cdiv(total, lane) * lane
        pad = padded - total
        flat = jnp.pad(x.reshape(-1), (0, pad)).reshape(padded // lane, lane)

    rows = flat.shape[0]
    tile_rows = _pick_row_tile(rows, lane, itemsize)
    grid = (pl.cdiv(rows, tile_rows),)  # ragged last block handled by Pallas

    out = pl.pallas_call(
        _copy_kernel,
        out_shape=jax.ShapeDtypeStruct(flat.shape, flat.dtype),
        grid=grid,
        in_specs=[pl.BlockSpec((tile_rows, lane), lambda i: (i, 0))],
        out_specs=pl.BlockSpec((tile_rows, lane), lambda i: (i, 0)),
        compiler_params=pltpu.CompilerParams(
            dimension_semantics=("parallel",),
            vmem_limit_bytes=_VMEM_LIMIT_BYTES,
        ),
        cost_estimate=pl.CostEstimate(
            flops=0, transcendentals=0, bytes_accessed=2 * flat.size * itemsize
        ),
    )(flat)

    if pad:
        out = out.reshape(-1)[:total]
    return out.reshape(x.shape)


def register_variable_forward(x, name, dict_out, *, materialize=False):
    """Pallas equivalent of RegisterVariable.forward (identity + dict registration).

    Default path (materialize=False) is the faithful, fastest lowering: the
    module is a pure identity, so no kernel runs and x is registered and
    returned.  materialize=True forces a genuinely independent copy (a distinct
    HBM buffer, no input/output aliasing) through the Pallas copy kernel.
    """
    y = _materialized_copy(x) if materialize else x
    # TODO(synk): the Python-dict registration is a host-side side effect with
    # no in-kernel equivalent; it is performed here in the wrapper.
    dict_out[name] = y
    return y


if __name__ == "__main__":
    key = jax.random.PRNGKey(0)
    dict_out = {}

    # Primary shape implied by the module's usage.
    x = jax.random.normal(key, (2, 4, 16, 16), dtype=jnp.float32)

    # Fast path: faithful identity lowering (no kernel, zero HBM traffic).
    y_fast = register_variable_forward(x, "feat", dict_out)
    assert y_fast is x and dict_out["feat"] is x

    # Kernel path: genuine materialized copy (independent buffer).
    y = register_variable_forward(x, "feat_copy", dict_out, materialize=True)
    jax.block_until_ready(y)
    assert y.shape == x.shape
    assert bool(jnp.all(y == x))

    # Exercise the cdiv multi-step tiling path (rows not a multiple of the tile).
    k1, k2 = jax.random.split(key)
    x2 = jax.random.normal(k1, (8, 128, 130), dtype=jnp.float32)
    y2 = register_variable_forward(x2, "feat2", dict_out, materialize=True)
    jax.block_until_ready(y2)
    assert bool(jnp.all(y2 == x2))

    # Exercise the bf16 (16-row sublane alignment) path.
    x3 = jax.random.normal(k2, (4, 96, 512), dtype=jnp.float32).astype(jnp.bfloat16)
    y3 = register_variable_forward(x3, "feat3", dict_out, materialize=True)
    jax.block_until_ready(y3)
    assert bool(jnp.all(y3 == x3))

    # Exercise the padded path (element count not a multiple of 128).
    x4 = jax.random.normal(key, (3, 5, 7), dtype=jnp.float32)
    y4 = register_variable_forward(x4, "feat4", dict_out, materialize=True)
    jax.block_until_ready(y4)
    assert bool(jnp.all(y4 == x4))

    print("KERNEL_OK")
</pallas_src>

<mosaic_0001>
module attributes {stable_mosaic.version = 11 : i64} {
  func.func @_copy_kernel(%arg0: i32, %arg1: memref<1x2048xf32, #tpu.memory_space<vmem>>, %arg2: memref<1x2048xf32, #tpu.memory_space<vmem>>) attributes {dimension_semantics = [#tpu.dimension_semantics<parallel>], iteration_bounds = array<i64: 1>, scalar_prefetch = 0 : i64, scratch_operands = 0 : i64, tpu.core_type = #tpu.core_type<tc>, window_params = [{transform_indices = @transform_0, window_bounds = array<i64: 1, 2048>}, {transform_indices = @transform_1, window_bounds = array<i64: 1, 2048>}]} {
    %c0 = arith.constant 0 : index
    %c0_0 = arith.constant 0 : index
    %0 = vector.load %arg1[%c0, %c0_0] : memref<1x2048xf32, #tpu.memory_space<vmem>>, vector<1x2048xf32>
    %c0_1 = arith.constant 0 : index
    %c0_2 = arith.constant 0 : index
    %1 = vector.load %arg2[%c0_1, %c0_2] : memref<1x2048xf32, #tpu.memory_space<vmem>>, vector<1x2048xf32>
    tpu.vector_store %arg2[%c0_1, %c0_2], %0 {strides = array<i32>} : memref<1x2048xf32, #tpu.memory_space<vmem>>, vector<1x2048xf32>,
    return
  }
  func.func @transform_0(%arg0: i32) -> (i32, i32) {
    %c0_i32 = arith.constant 0 : i32
    %c0_i32_0 = arith.constant 0 : i32
    return %arg0, %c0_i32 : i32, i32
  }
  func.func @transform_1(%arg0: i32) -> (i32, i32) {
    %c0_i32 = arith.constant 0 : i32
    %c0_i32_0 = arith.constant 0 : i32
    return %arg0, %c0_i32 : i32, i32
  }
}

</mosaic_0001>

<bundles_post_ra>
// kernel: tpu_custom_call.1
= control target key start
LH: loop header
LB: loop body
LE: loop exit
PB: predicated region body
PF: predicated region fallthrough
CT: control target
= control target key end

     0   :  { %6 = vsyncpa [#allocation3], 0  ;;  %s116_s0 = inlined_call_operand.hbm [shape: f32[1,2048], index: 0, kind: input, shape index: {}]   ;;  %s117_s1 = inlined_call_operand.hbm [shape: f32[1,2048], index: 1, kind: output, shape index: {}]  }
   0x1   :  { %7 = vsyncpa [#allocation4], 0  ;;  %s13_s8 = sshll.u32 %s116_s0, 4  ;;  %s98_s9 = smov [#allocation2]   ;;  %s14_s8 = int_to_ptr.hbm [resolvable:$true] %s13_s8 }
   0x2   :  { %s15_s10 = sshll.u32 %s98_s9, 4  ;;  %s16_s10 = int_to_ptr.vmem [resolvable:$true] %s15_s10 }
   0x3   :  { %18 = dma.hbm_to_vmem [thread:$0]  %s14_s8, 256, %s16_s10, [#allocation3]  }
   0x4   :  { %94 = dma.done.wait [#allocation3], 256  }
   0x5   :  { %95 = vsyncadd [#allocation3], 4294967040  ;;  %s99_s11 = smov [#allocation5]   ;;  %s34_s15 = sshll.u32 %s117_s1, 4  ;;  %v23_v0 = vld [vmem:[#allocation2] sm:$0xff]  ;;  %v24_v1 = vld [vmem:[#allocation2 + $0x8] sm:$0xff]  ;;  %s35_s15 = int_to_ptr.hbm [resolvable:$true] %s34_s15 }
   0x6   :  { %s32_s12 = sshll.u32 %s99_s11, 4  ;;  %25 = vst [vmem:[#allocation5] sm:$0xff] %v23_v0  ;;  %s33_s12 = int_to_ptr.vmem [resolvable:$true] %s32_s12 }
   0x7   :  { %26 = vst [vmem:[#allocation5 + $0x8] sm:$0xff] %v24_v1 }
   0x8   :  { %37 = dma.vmem_to_hbm [thread:$0]  %s33_s12, 256, %s35_s15, [#allocation4]  }
   0x9   :  { %96 = dma.done.wait [#allocation4], 256  }
   0xa   :  { %97 = vsyncadd [#allocation4], 4294967040 }
   0xb   :  { %42 = vsyncpa [#allocation3], 1 }
   0xc   :  { %43 = vsyncpa [#allocation4], 1 }

</bundles_post_ra>
